<compile_context>
chip_gen: v7x
topology: tpu7x:2x2x1
jax: 0.10.0
libtpu: 0.0.40
codegen_flags: <defaults>
</compile_context>

<pallas_src>
import jax
import jax.numpy as jnp
from jax.experimental import pallas as pl
from jax.experimental.pallas import tpu as pltpu


def _fused_kernel(x1_ref, params_ref, o_ref):
    # x1_ref:     (N, M)        raw input with the B=1 dim squeezed; contract over N
    # params_ref: (2N + 1, OUT) packed rows: [ W^T (N,OUT) ; W (OUT,IN) ; bias (1,OUT) ]
    # o_ref:      (M, OUT)
    x1 = x1_ref[...]
    N, M = x1.shape
    OUT = o_ref.shape[-1]

    w_t = params_ref[0:N, :]               # (N, OUT)  transposed weight for the contraction
    w = params_ref[N:2 * N, :]             # (OUT, IN) original layout for the max epilogue
    b = params_ref[2 * N:2 * N + 1, :]     # (1, OUT)

    # v2[m, k] = sum_n x1[n, m] * w_t[n, k] + b[k]
    #          == linear(permute(x1, (0, 2, 1)), W, bias)   (B = 1 squeezed)
    # N is tiny & static -> unrolled VPU multiply-adds; both operands are row
    # reads that broadcast with stride 0 (no lane-indexed gathers, no MXU).
    acc = jnp.zeros((M, OUT), jnp.float32)
    for n in range(N):
        acc = acc + x1[n, :, None] * w_t[n, None, :]
    v2 = acc + b                                           # (M, OUT)

    # Folded epilogue:
    #   x2 = relu(v2); x3 = x2/v2 (== step(v2)); v6 = max(x2, W); z = max(x3, v6)
    # => z = where(v2 > 0, max(max(v2, 1), W), max(W, 0))
    # Matches torch except at v2 == 0.0 exactly (torch yields 0/0 = NaN there).
    pos = jnp.maximum(jnp.maximum(v2, jnp.float32(1.0)), w)
    neg = jnp.maximum(w, jnp.float32(0.0))
    o_ref[...] = jnp.where(v2 > 0.0, pos, neg)


def model_forward(x1, weight, bias):
    """Replicates Model.forward.  x1: (B, N, M) float32, B must be 1."""
    B, N, M = x1.shape
    OUT, IN = weight.shape
    assert B == 1, B
    # After permute(0, 2, 1) the linear layer consumes N features.
    assert N == IN, (N, IN)
    # torch.max(x2, weight) broadcasts (M, OUT) against (OUT, IN); it must
    # resolve back to (M, OUT) for the declared out_shape.
    assert (OUT == M or OUT == 1) and (IN == OUT or IN == 1), (M, OUT, IN)

    # Pack W^T (contraction layout), W (epilogue layout) and bias into a single
    # array -> one DMA descriptor for all parameters instead of two/three.
    params = jnp.concatenate(
        [weight.T.astype(jnp.float32),                      # (N, OUT)
         weight.astype(jnp.float32),                        # (OUT, IN)
         bias.reshape(1, OUT).astype(jnp.float32)],         # (1, OUT)
        axis=0)                                             # (2N + 1, OUT)

    x1_2d = x1.reshape(N, M)                                # squeeze degenerate B = 1

    out2d = pl.pallas_call(
        _fused_kernel,
        out_shape=jax.ShapeDtypeStruct((M, OUT), jnp.float32),
        in_specs=[
            pl.BlockSpec(memory_space=pltpu.MemorySpace.VMEM),
            pl.BlockSpec(memory_space=pltpu.MemorySpace.VMEM),
        ],
        out_specs=pl.BlockSpec(memory_space=pltpu.MemorySpace.VMEM),
    )(x1_2d, params)

    return out2d.reshape(B, M, OUT)


if __name__ == "__main__":
    key = jax.random.PRNGKey(0)
    kx, kw, kb = jax.random.split(key, 3)

    # Input matching torch.randn(1, 2, 2)
    x1 = jax.random.normal(kx, (1, 2, 2), dtype=jnp.float32)

    # Deterministic nn.Linear(2, 2) parameters (PyTorch-style uniform init).
    in_features, out_features = 2, 2
    bound = 1.0 / (in_features ** 0.5)
    weight = jax.random.uniform(kw, (out_features, in_features),
                                minval=-bound, maxval=bound, dtype=jnp.float32)
    bias = jax.random.uniform(kb, (out_features,),
                              minval=-bound, maxval=bound, dtype=jnp.float32)

    z = model_forward(x1, weight, bias)
    jax.block_until_ready(z)

    # Pure-JAX reference mirroring the PyTorch forward.
    v1 = jnp.transpose(x1, (0, 2, 1))
    v2 = v1 @ weight.T + bias
    x2 = jnp.maximum(v2, 0.0)
    x3 = x2 / v2   # random v2 is never exactly 0, so this matches the select
    ref = jnp.maximum(x3, jnp.maximum(x2, weight[None]))
    assert jnp.allclose(z, ref, atol=1e-6, equal_nan=True), (z, ref)

    print("KERNEL_OK")
</pallas_src>

<mosaic_0001>
module attributes {stable_mosaic.version = 11 : i64} {
  func.func @_fused_kernel(%arg0: memref<2x2xf32, #tpu.memory_space<vmem>>, %arg1: memref<5x2xf32, #tpu.memory_space<vmem>>, %arg2: memref<2x2xf32, #tpu.memory_space<vmem>>) attributes {dimension_semantics = [], scalar_prefetch = 0 : i64, scratch_operands = 0 : i64, tpu.core_type = #tpu.core_type<tc>} {
    %c0 = arith.constant 0 : index
    %c0_0 = arith.constant 0 : index
    %0 = vector.load %arg0[%c0, %c0_0] : memref<2x2xf32, #tpu.memory_space<vmem>>, vector<2x2xf32>
    %c0_1 = arith.constant 0 : index
    %c0_2 = arith.constant 0 : index
    %1 = vector.load %arg1[%c0_1, %c0_2] : memref<5x2xf32, #tpu.memory_space<vmem>>, vector<2x2xf32>
    %c2 = arith.constant 2 : index
    %c0_3 = arith.constant 0 : index
    %2 = vector.load %arg1[%c2, %c0_3] : memref<5x2xf32, #tpu.memory_space<vmem>>, vector<2x2xf32>
    %c4 = arith.constant 4 : index
    %c0_4 = arith.constant 0 : index
    %3 = vector.load %arg1[%c4, %c0_4] : memref<5x2xf32, #tpu.memory_space<vmem>>, vector<1x2xf32>
    %cst = arith.constant 0.000000e+00 : f32
    %4 = vector.broadcast %cst : f32 to vector<2x2xf32>
    %5 = vector.extract_strided_slice %0 {offsets = [0, 0], sizes = [1, 2], strides = [1, 1]} : vector<2x2xf32> to vector<1x2xf32>
    %6 = vector.shape_cast %5 : vector<1x2xf32> to vector<2xf32>
    %7 = vector.shape_cast %6 : vector<2xf32> to vector<2x1xf32>
    %8 = vector.extract_strided_slice %1 {offsets = [0, 0], sizes = [1, 2], strides = [1, 1]} : vector<2x2xf32> to vector<1x2xf32>
    %9 = vector.shape_cast %8 : vector<1x2xf32> to vector<2xf32>
    %10 = vector.shape_cast %9 : vector<2xf32> to vector<1x2xf32>
    %11 = vector.broadcast %7 : vector<2x1xf32> to vector<2x2xf32>
    %12 = vector.broadcast %10 : vector<1x2xf32> to vector<2x2xf32>
    %13 = arith.mulf %11, %12 : vector<2x2xf32>
    %14 = arith.addf %4, %13 : vector<2x2xf32>
    %15 = vector.extract_strided_slice %0 {offsets = [1, 0], sizes = [1, 2], strides = [1, 1]} : vector<2x2xf32> to vector<1x2xf32>
    %16 = vector.shape_cast %15 : vector<1x2xf32> to vector<2xf32>
    %17 = vector.shape_cast %16 : vector<2xf32> to vector<2x1xf32>
    %18 = vector.extract_strided_slice %1 {offsets = [1, 0], sizes = [1, 2], strides = [1, 1]} : vector<2x2xf32> to vector<1x2xf32>
    %19 = vector.shape_cast %18 : vector<1x2xf32> to vector<2xf32>
    %20 = vector.shape_cast %19 : vector<2xf32> to vector<1x2xf32>
    %21 = vector.broadcast %17 : vector<2x1xf32> to vector<2x2xf32>
    %22 = vector.broadcast %20 : vector<1x2xf32> to vector<2x2xf32>
    %23 = arith.mulf %21, %22 : vector<2x2xf32>
    %24 = arith.addf %14, %23 : vector<2x2xf32>
    %25 = vector.broadcast %3 : vector<1x2xf32> to vector<2x2xf32>
    %26 = arith.addf %24, %25 : vector<2x2xf32>
    %cst_5 = arith.constant 1.000000e+00 : f32
    %27 = vector.broadcast %cst_5 : f32 to vector<2x2xf32>
    %28 = arith.maximumf %26, %27 : vector<2x2xf32>
    %29 = arith.maximumf %28, %2 : vector<2x2xf32>
    %cst_6 = arith.constant 0.000000e+00 : f32
    %30 = vector.broadcast %cst_6 : f32 to vector<2x2xf32>
    %31 = arith.maximumf %2, %30 : vector<2x2xf32>
    %cst_7 = arith.constant 0.000000e+00 : f32
    %32 = vector.broadcast %cst_7 : f32 to vector<2x2xf32>
    %33 = arith.cmpf ogt, %26, %32 : vector<2x2xf32>
    %34 = arith.select %33, %29, %31 : vector<2x2xi1>, vector<2x2xf32>
    %c0_8 = arith.constant 0 : index
    %c0_9 = arith.constant 0 : index
    %35 = vector.load %arg2[%c0_8, %c0_9] : memref<2x2xf32, #tpu.memory_space<vmem>>, vector<2x2xf32>
    tpu.vector_store %arg2[%c0_8, %c0_9], %34 {strides = array<i32>} : memref<2x2xf32, #tpu.memory_space<vmem>>, vector<2x2xf32>,
    return
  }
}

</mosaic_0001>

<bundles_post_ra>
// kernel: tpu_custom_call.1
= control target key start
LH: loop header
LB: loop body
LE: loop exit
PB: predicated region body
PF: predicated region fallthrough
CT: control target
= control target key end

     0   :  { %v16_v0 = vlaneseq  ;;  %s134_s0 = inlined_call_operand.vmem [shape: f32[2,2], index: 0, kind: input, shape index: {}]   ;;  %s135_s1 = inlined_call_operand.vmem [shape: f32[5,2], index: 1, kind: input, shape index: {}]   ;;  %s136_s2 = inlined_call_operand.hbm [shape: f32[2,2], index: 2, kind: output, shape index: {}]  }
   0x1   :  { %7 = vsyncpa [#allocation3], 0  ;;  %v12_v2 = vld [vmem:[%s134_s0] sm:$0x3]  ;;  %v68_v14 = vld [vmem:[%s135_s1 + $0x4] ss:$0 sm:$0xff] }
   0x2   :  { %v17_v1 = vshrl.u32 %v16_v0, 7  ;;  %v13_v7 = vld [vmem:[%s135_s1] sm:$0x3]  ;;  %v14_v16 = vld [vmem:[%s135_s1 + $0x2] sm:$0x3]  ;;  %s94_s16 = smov [#allocation2]  }
   0x3   :  { %v49_v19 = vmax.f32 %v14_v16, 0.0  ;;  %s60_s17 = sshll.u32 %s94_s16, 4  ;;  %vm52_vm0 = vcmask 9216   ;;  %s61_s17 = int_to_ptr.vmem [resolvable:$true] %s60_s17 }
   0x4   :  { %v18_v3 = vsub.s32 0, %v17_v1  ;;  %v31_v4 = vsub.s32 1, %v17_v1  ;;  %s70_s18 = scalar_lea.vmem %s61_s17, 32  ;;  %p75_p1 = scmp.lt.s32.totalorder %s61_s17, %s61_s17 }
   0x5   :  { %p71_p0 = scmp.ne.s32.totalorder %s61_s17, %s70_s18  ;;  %p76_p2 = scmp.lt.s32.totalorder %s70_s18, %s70_s18 }
   0x6   :  { %v19_v5 = vrot.slane %v12_v2, %v18_v3  ;;  %v32_v6 = vrot.slane %v12_v2, %v31_v4  ;;  %v26_v9 = vrot.slane %v13_v7, %v18_v3  ;;  %v39_v10 = vrot.slane %v13_v7, %v31_v4 }
   0x7   :  { %p77_p3 = por %p76_p2, %p75_p1 }
   0x8   :  { %21 = vbcast.lane.b32.xlu0 %v19_v5, 256 }
   0x9   :  { %p78_p4 = pnand %p77_p3, %p71_p0 }
   0xc   :  { %34 = vbcast.lane.b32.xlu0 %v32_v6, 256 }
  0x7a   :  { %v22_v8 = vpop.permute.xlu0 %21 }
  0x7b   :  { %v27_v12 = vmul.f32 %v26_v9, %v22_v8 }
  0x7e   :  { %v35_v11 = vpop.permute.xlu0 %34 }
  0x7f   :  { %v40_v13 = vmul.f32 %v39_v10, %v35_v11 }
  0x81   :  { %v41_v15 = vadd.f32 %v40_v13, %v27_v12 }
  0x83   :  { %v46_v17 = vadd.f32 %v68_v14, %v41_v15 }
  0x85   :  { %v47_v18 = vmax.f32 %v46_v17, 1.0  ;;  %vm50_vm1 = vcmp.gt.f32.partialorder %v46_v17, 0.0 }
  0x87   :  { %v48_v20 = vmax.f32 %v47_v18, %v14_v16 }
  0x89   :  { %v51_v21 = vsel %vm50_vm1, %v48_v20, %v49_v19 }
  0x8a   :  { %53 = vst.msk [vmem:[#allocation2] sm:$0x3] %vm52_vm0, %v51_v21 }
  0x8b   :  { %81 = shalt.err (!%p78_p4)
}
  0x8c   :  { %s82_s20 = scalar_lea.hbm %s136_s2, 32 }
  0x8d   :  { %p83_p5 = scmp.ne.s32.totalorder %s136_s2, %s82_s20  ;;  %p86_p6 = scmp.lt.u32.totalorder %s82_s20, %s136_s2 }
  0x8f   :  { %p88_p7 = pnand %p86_p6, %p83_p5 }
  0x91   :  { %91 = shalt.err (!%p88_p7)
}
  0x92   :  { %63 = dma.vmem_to_hbm [thread:$0]  %s61_s17, 32, %s136_s2, [#allocation3]  }
  0x93   :  { %92 = dma.done.wait [#allocation3], 32  }
  0x94   :  { %93 = vsyncadd [#allocation3], 4294967264 }
  0x95   :  { %67 = vsyncpa [#allocation3], 1 }

</bundles_post_ra>
